<compile_context>
chip_gen: v6e
topology: v6e:2x2x1
jax: 0.10.0
libtpu: 0.0.40
codegen_flags: <defaults>
</compile_context>

<pallas_src>
import functools
import math

import jax
import jax.numpy as jnp
from jax.experimental import pallas as pl
from jax.experimental.pallas import tpu as pltpu

LN_EPS = 1e-5


def _round_up(a: int, b: int) -> int:
    return -(-a // b) * b


def _pad2d(a, rows: int, cols: int):
    r, c = a.shape
    if (r, c) == (rows, cols):
        return a
    return jnp.pad(a, ((0, rows - r), (0, cols - c)))


# --------------------------------------------------------------------------
# Parameter preparation (one-time: cast to bf16 + lane-dense zero padding).
# --------------------------------------------------------------------------
def prepare_params(w1, b1, gamma, beta, w2):
    """Pad/cast module parameters once, hoisted out of the per-call path.

    w1: (in_dim, hidden) or None; b1/gamma/beta: (hidden,) or None;
    w2: (hidden, out_dim).  Pass w1=None for the hidden_dim == in_dim module
    configuration (identity in_proj/in_norm, projection only).

    The LayerNorm math in the kernel relies on padded columns of W1, padded
    lanes of b1/gamma/beta being exactly zero -- guaranteed here.
    """
    out_dim = int(w2.shape[1])
    if w1 is None:
        hidden = int(w2.shape[0])
        hid_p = _round_up(hidden, 128)
        out_p = _round_up(out_dim, 128)
        return dict(
            w1=None, vecs=None,
            w2=_pad2d(w2.astype(jnp.bfloat16), hid_p, out_p),
            dims=(hidden, hidden, out_dim))

    in_dim, hidden = (int(d) for d in w1.shape)
    in_p = _round_up(in_dim, 128)
    hid_p = _round_up(hidden, 128)
    out_p = _round_up(out_dim, 128)
    # b1 / gamma / beta packed into a single (3, hid_p) f32 block.
    vecs = jnp.zeros((3, hid_p), jnp.float32)
    vecs = vecs.at[0, :hidden].set(b1.astype(jnp.float32))
    vecs = vecs.at[1, :hidden].set(gamma.astype(jnp.float32))
    vecs = vecs.at[2, :hidden].set(beta.astype(jnp.float32))
    return dict(
        w1=_pad2d(w1.astype(jnp.bfloat16), in_p, hid_p),
        vecs=vecs,
        w2=_pad2d(w2.astype(jnp.bfloat16), hid_p, out_p),
        dims=(in_dim, hidden, out_dim))


# --------------------------------------------------------------------------
# Kernels.
# --------------------------------------------------------------------------
def _fused_kernel(x_ref, w1_ref, vecs_ref, w2_ref, out_ref, *, hidden: int):
    # x: (tm, in_p) bf16; w1: (in_p, hid_p) bf16; vecs: (3, hid_p) f32
    # rows = [b1; gamma; beta]; w2: (hid_p, out_p) bf16; out: (tm, out_p).
    hid_p = w1_ref.shape[1]

    # in_proj: bf16 MXU matmul, f32 accumulation, + bias.
    h = jnp.dot(x_ref[...], w1_ref[...],
                preferred_element_type=jnp.float32) + vecs_ref[0:1, :]

    # in_norm: two-pass LayerNorm over the TRUE hidden dim.  Padded hidden
    # lanes of h are exactly 0 (zero W1 columns / zero b1), so the mean-sum is
    # exact; padded lanes of (h - mean) are masked to 0 so the variance-sum is
    # exact too.  Biased variance, like PyTorch LayerNorm.
    inv_hidden = 1.0 / hidden
    mean = jnp.sum(h, axis=-1, keepdims=True) * inv_hidden
    centered = h - mean
    if hid_p != hidden:
        lane = jax.lax.broadcasted_iota(jnp.int32, (1, hid_p), 1)
        centered = jnp.where(lane < hidden, centered, 0.0)
    var = jnp.sum(centered * centered, axis=-1, keepdims=True) * inv_hidden
    inv_std = jax.lax.rsqrt(var + LN_EPS)
    # Padded lanes of gamma/beta are 0, so padded lanes of h_norm stay 0.
    h_norm = centered * inv_std * vecs_ref[1:2, :] + vecs_ref[2:3, :]

    # proj (no bias): bf16 MXU matmul, f32 accumulation.
    out_ref[...] = jnp.dot(h_norm.astype(w2_ref.dtype), w2_ref[...],
                           preferred_element_type=jnp.float32
                           ).astype(out_ref.dtype)


def _proj_kernel(x_ref, w2_ref, out_ref):
    # hidden_dim == in_dim branch of the module: projection only.
    out_ref[...] = jnp.dot(x_ref[...], w2_ref[...],
                           preferred_element_type=jnp.float32
                           ).astype(out_ref.dtype)


# --------------------------------------------------------------------------
# Tiling / VMEM budgeting.
# --------------------------------------------------------------------------
def _pick_tile_and_vmem_limit(n_rows, row_in_bytes, row_out_bytes,
                              row_interm_bytes, weight_bytes):
    """Choose row-tile size and scoped-VMEM limit from the real footprint."""
    try:
        vmem_cap = int(pltpu.get_tpu_info().vmem_capacity_bytes)
    except Exception:
        vmem_cap = 64 * 1024 * 1024  # conservative: v7x per-TC physical VMEM
    budget = int(vmem_cap * 0.85)    # headroom for Mosaic internal scratch

    if weight_bytes > budget:
        # TODO(synk): add a K/N-tiled fallback (accumulator grid axis) for
        # weight matrices too large to stay fully resident (v7x 64 MiB VMEM).
        raise ValueError("TextProjHead weights do not fit resident in VMEM")

    def footprint(tm):
        # double-buffered x / out tiles + resident weights + f32 intermediates
        return (weight_bytes + 2 * tm * row_in_bytes
                + 2 * tm * row_out_bytes + tm * row_interm_bytes)

    tm = _round_up(min(max(n_rows, 8), 1024), 8)
    while tm > 8 and footprint(tm) > budget:
        tm = max(8, _round_up(tm // 2, 8))
    # Keep >= 2 row blocks when there is enough work so the "parallel" row axis
    # can be split across v7x's two TensorCores.
    if n_rows >= 256:
        while tm >= n_rows and tm >= 256:
            tm = _round_up(tm // 2, 8)

    vmem_limit = min(budget, max(footprint(tm) + (8 << 20), 32 << 20))
    return tm, int(vmem_limit)


def _resident_spec(shape, single_buffer: bool):
    """BlockSpec for a block whose index never changes (resident weights)."""
    index_map = lambda i: (0,) * len(shape)
    if single_buffer:
        # Constant block index -> double-buffering only burns VMEM.
        return pl.BlockSpec(shape, index_map, pipeline_mode=pl.Buffered(1))
    return pl.BlockSpec(shape, index_map)


# --------------------------------------------------------------------------
# Public forward.
# --------------------------------------------------------------------------
def text_proj_head(x, params, *, out_dtype=jnp.float32):
    """TextProjHead forward on x of shape (..., in_dim); returns (..., out_dim)."""
    in_dim, hidden, out_dim = params["dims"]
    assert x.shape[-1] == in_dim
    lead = x.shape[:-1]
    N = math.prod(lead) if lead else 1
    x2 = x.reshape(N, in_dim)

    fused = params["w1"] is not None
    if fused:
        in_p, hid_p = params["w1"].shape
        out_p = params["w2"].shape[1]
        weight_bytes = ((in_p * hid_p + hid_p * out_p) * 2  # bf16 weights
                        + 3 * hid_p * 4)                    # packed b1/gamma/beta
        row_interm = 3 * hid_p * 4                          # h / centered / h_norm
    else:
        in_p, out_p = params["w2"].shape
        weight_bytes = in_p * out_p * 2
        row_interm = 0

    out_itemsize = jnp.dtype(out_dtype).itemsize
    tm, vmem_limit = _pick_tile_and_vmem_limit(
        N, row_in_bytes=in_p * 2, row_out_bytes=out_p * out_itemsize,
        row_interm_bytes=row_interm, weight_bytes=weight_bytes)
    n_p = _round_up(N, tm)

    # Only pad / cast activations when actually needed; 128-aligned production
    # shapes skip this extra HBM pass entirely.
    xb = x2 if x2.dtype == jnp.bfloat16 else x2.astype(jnp.bfloat16)
    if (n_p, in_p) != (N, in_dim):
        xb = jnp.pad(xb, ((0, n_p - N), (0, in_p - in_dim)))

    def run(single_buffer_weights):
        if fused:
            kernel = functools.partial(_fused_kernel, hidden=hidden)
            in_specs = [
                pl.BlockSpec((tm, in_p), lambda i: (i, 0)),
                _resident_spec((in_p, hid_p), single_buffer_weights),
                _resident_spec((3, hid_p), single_buffer_weights),
                _resident_spec((hid_p, out_p), single_buffer_weights),
            ]
            args = (xb, params["w1"], params["vecs"], params["w2"])
        else:
            kernel = _proj_kernel
            in_specs = [
                pl.BlockSpec((tm, in_p), lambda i: (i, 0)),
                _resident_spec((in_p, out_p), single_buffer_weights),
            ]
            args = (xb, params["w2"])
        return pl.pallas_call(
            kernel,
            out_shape=jax.ShapeDtypeStruct((n_p, out_p), out_dtype),
            grid_spec=pltpu.PrefetchScalarGridSpec(
                num_scalar_prefetch=0,
                grid=(n_p // tm,),
                in_specs=in_specs,
                out_specs=pl.BlockSpec((tm, out_p), lambda i: (i, 0)),
            ),
            compiler_params=pltpu.CompilerParams(
                dimension_semantics=("parallel",),
                vmem_limit_bytes=vmem_limit),
        )(*args)

    try:
        out = run(True)
    except Exception:
        # jax version without BlockSpec pipeline_mode / Buffered(1) support:
        # fall back to default double-buffered resident weights.
        out = run(False)

    return out[:N, :out_dim].reshape(*lead, out_dim)


# --------------------------------------------------------------------------
# Pure-JAX reference mirroring the bf16-matmul / f32-LayerNorm path.
# --------------------------------------------------------------------------
def _reference(x, w1, b1, gamma, beta, w2):
    xb = x.astype(jnp.bfloat16)
    if w1 is not None:
        h = jnp.dot(xb, w1.astype(jnp.bfloat16),
                    preferred_element_type=jnp.float32) + b1
        mean = jnp.mean(h, axis=-1, keepdims=True)
        var = jnp.mean((h - mean) ** 2, axis=-1, keepdims=True)
        h = (h - mean) / jnp.sqrt(var + LN_EPS) * gamma + beta
        xb = h.astype(jnp.bfloat16)
    return jnp.dot(xb, w2.astype(jnp.bfloat16),
                   preferred_element_type=jnp.float32)


if __name__ == "__main__":
    # Small shapes consistent with the module; all dims deliberately
    # non-multiples of 128 to exercise the padding/masking path.
    batch, seq = 2, 8
    in_dim, hidden_dim, out_dim = 32, 16, 24

    key = jax.random.PRNGKey(0)
    kx, kw1, kb1, kg, kb, kw2, kx2, kw3 = jax.random.split(key, 8)

    x = jax.random.normal(kx, (batch, seq, in_dim), dtype=jnp.float32)
    w1 = jax.random.normal(kw1, (in_dim, hidden_dim), dtype=jnp.float32) * 0.05
    b1 = jax.random.normal(kb1, (hidden_dim,), dtype=jnp.float32) * 0.05
    gamma = 1.0 + 0.1 * jax.random.normal(kg, (hidden_dim,), dtype=jnp.float32)
    beta = 0.1 * jax.random.normal(kb, (hidden_dim,), dtype=jnp.float32)
    w2 = jax.random.normal(kw2, (hidden_dim, out_dim), dtype=jnp.float32) * 0.05

    # Full path: in_proj -> in_norm -> proj (hidden_dim != in_dim).
    params = prepare_params(w1, b1, gamma, beta, w2)
    y = jax.block_until_ready(text_proj_head(x, params))
    y_ref = _reference(x.reshape(-1, in_dim), w1, b1, gamma, beta, w2
                       ).reshape(batch, seq, out_dim)
    assert y.shape == (batch, seq, out_dim)
    assert jnp.allclose(y, y_ref, atol=2e-3, rtol=2e-3), "fused path mismatch"

    # hidden_dim == in_dim path: identity in_proj / in_norm, projection only.
    x2 = jax.random.normal(kx2, (batch, seq, hidden_dim), dtype=jnp.float32)
    w3 = jax.random.normal(kw3, (hidden_dim, out_dim), dtype=jnp.float32) * 0.05
    params2 = prepare_params(None, None, None, None, w3)
    y2 = jax.block_until_ready(text_proj_head(x2, params2))
    y2_ref = _reference(x2.reshape(-1, hidden_dim), None, None, None, None, w3
                        ).reshape(batch, seq, out_dim)
    assert jnp.allclose(y2, y2_ref, atol=2e-3, rtol=2e-3), "proj-only mismatch"

    print("KERNEL_OK")
</pallas_src>

<mosaic_0001>
module attributes {stable_mosaic.version = 11 : i64} {
  func.func @_fused_kernel(%arg0: i32, %arg1: memref<16x128xbf16, #tpu.memory_space<vmem>>, %arg2: memref<128x128xbf16, #tpu.memory_space<vmem>>, %arg3: memref<3x128xf32, #tpu.memory_space<vmem>>, %arg4: memref<128x128xbf16, #tpu.memory_space<vmem>>, %arg5: memref<16x128xf32, #tpu.memory_space<vmem>>) attributes {dimension_semantics = [#tpu.dimension_semantics<parallel>], iteration_bounds = array<i64: 1>, scalar_prefetch = 0 : i64, scratch_operands = 0 : i64, tpu.core_type = #tpu.core_type<tc>, window_params = [{transform_indices = @transform_0, window_bounds = array<i64: 16, 128>}, {pipeline_mode = #tpu.pipeline_mode<synchronous>, transform_indices = @transform_1, window_bounds = array<i64: 128, 128>}, {pipeline_mode = #tpu.pipeline_mode<synchronous>, transform_indices = @transform_2, window_bounds = array<i64: 3, 128>}, {pipeline_mode = #tpu.pipeline_mode<synchronous>, transform_indices = @transform_3, window_bounds = array<i64: 128, 128>}, {transform_indices = @transform_4, window_bounds = array<i64: 16, 128>}]} {
    %c0 = arith.constant 0 : index
    %c0_0 = arith.constant 0 : index
    %0 = vector.load %arg1[%c0, %c0_0] : memref<16x128xbf16, #tpu.memory_space<vmem>>, vector<16x128xbf16>
    %c0_1 = arith.constant 0 : index
    %c0_2 = arith.constant 0 : index
    %1 = vector.load %arg2[%c0_1, %c0_2] : memref<128x128xbf16, #tpu.memory_space<vmem>>, vector<128x128xbf16>
    %cst = arith.constant dense<0.000000e+00> : vector<16x128xf32>
    %2 = tpu.matmul %0, %1, %cst {dimension_numbers = #tpu.dot_dimension_numbers<[1], [0], [0], [1], [0, 0, 1, 1], [], []>} : vector<16x128xbf16>, vector<128x128xbf16>, vector<16x128xf32> -> vector<16x128xf32>
    %c0_3 = arith.constant 0 : index
    %c0_4 = arith.constant 0 : index
    %3 = vector.load %arg3[%c0_3, %c0_4] : memref<3x128xf32, #tpu.memory_space<vmem>>, vector<1x128xf32>
    %4 = vector.broadcast %3 : vector<1x128xf32> to vector<16x128xf32>
    %5 = arith.addf %2, %4 : vector<16x128xf32>
    %cst_5 = arith.constant dense<0.000000e+00> : vector<16xf32>
    %6 = vector.multi_reduction <add>, %5, %cst_5 [1] : vector<16x128xf32> to vector<16xf32>
    %7 = vector.shape_cast %6 : vector<16xf32> to vector<16x1xf32>
    %cst_6 = arith.constant 6.250000e-02 : f32
    %8 = vector.broadcast %cst_6 : f32 to vector<16x1xf32>
    %9 = arith.mulf %7, %8 : vector<16x1xf32>
    %10 = vector.broadcast %9 : vector<16x1xf32> to vector<16x128xf32>
    %11 = arith.subf %5, %10 : vector<16x128xf32>
    %12 = tpu.iota {dimensions = array<i32: 1>} : vector<1x128xi32>
    %c16_i32 = arith.constant 16 : i32
    %13 = vector.broadcast %c16_i32 : i32 to vector<1x128xi32>
    %14 = arith.cmpi slt, %12, %13 : vector<1x128xi32>
    %cst_7 = arith.constant 0.000000e+00 : f32
    %15 = vector.shape_cast %14 : vector<1x128xi1> to vector<1x128xi1>
    %16 = vector.broadcast %15 : vector<1x128xi1> to vector<16x128xi1>
    %17 = vector.broadcast %cst_7 : f32 to vector<16x128xf32>
    %18 = arith.select %16, %11, %17 : vector<16x128xi1>, vector<16x128xf32>
    %19 = arith.mulf %18, %18 : vector<16x128xf32>
    %cst_8 = arith.constant dense<0.000000e+00> : vector<16xf32>
    %20 = vector.multi_reduction <add>, %19, %cst_8 [1] : vector<16x128xf32> to vector<16xf32>
    %21 = vector.shape_cast %20 : vector<16xf32> to vector<16x1xf32>
    %cst_9 = arith.constant 6.250000e-02 : f32
    %22 = vector.broadcast %cst_9 : f32 to vector<16x1xf32>
    %23 = arith.mulf %21, %22 : vector<16x1xf32>
    %cst_10 = arith.constant 9.99999974E-6 : f32
    %24 = vector.broadcast %cst_10 : f32 to vector<16x1xf32>
    %25 = arith.addf %23, %24 : vector<16x1xf32>
    %26 = math.rsqrt %25 : vector<16x1xf32>
    %27 = vector.broadcast %26 : vector<16x1xf32> to vector<16x128xf32>
    %28 = arith.mulf %18, %27 : vector<16x128xf32>
    %c1 = arith.constant 1 : index
    %c0_11 = arith.constant 0 : index
    %29 = vector.load %arg3[%c1, %c0_11] : memref<3x128xf32, #tpu.memory_space<vmem>>, vector<1x128xf32>
    %30 = vector.broadcast %29 : vector<1x128xf32> to vector<16x128xf32>
    %31 = arith.mulf %28, %30 : vector<16x128xf32>
    %c2 = arith.constant 2 : index
    %c0_12 = arith.constant 0 : index
    %32 = vector.load %arg3[%c2, %c0_12] : memref<3x128xf32, #tpu.memory_space<vmem>>, vector<1x128xf32>
    %33 = vector.broadcast %32 : vector<1x128xf32> to vector<16x128xf32>
    %34 = arith.addf %31, %33 : vector<16x128xf32>
    %35 = arith.truncf %34 : vector<16x128xf32> to vector<16x128xbf16>
    %c0_13 = arith.constant 0 : index
    %c0_14 = arith.constant 0 : index
    %36 = vector.load %arg4[%c0_13, %c0_14] : memref<128x128xbf16, #tpu.memory_space<vmem>>, vector<128x128xbf16>
    %cst_15 = arith.constant dense<0.000000e+00> : vector<16x128xf32>
    %37 = tpu.matmul %35, %36, %cst_15 {dimension_numbers = #tpu.dot_dimension_numbers<[1], [0], [0], [1], [0, 0, 1, 1], [], []>} : vector<16x128xbf16>, vector<128x128xbf16>, vector<16x128xf32> -> vector<16x128xf32>
    %c0_16 = arith.constant 0 : index
    %c0_17 = arith.constant 0 : index
    %38 = vector.load %arg5[%c0_16, %c0_17] : memref<16x128xf32, #tpu.memory_space<vmem>>, vector<16x128xf32>
    tpu.vector_store %arg5[%c0_16, %c0_17], %37 {strides = array<i32>} : memref<16x128xf32, #tpu.memory_space<vmem>>, vector<16x128xf32>,
    return
  }
  func.func @transform_0(%arg0: i32) -> (i32, i32) {
    %c0_i32 = arith.constant 0 : i32
    %c0_i32_0 = arith.constant 0 : i32
    return %arg0, %c0_i32 : i32, i32
  }
  func.func @transform_1(%arg0: i32) -> (i32, i32) {
    %c0_i32 = arith.constant 0 : i32
    %c0_i32_0 = arith.constant 0 : i32
    %c0_i32_1 = arith.constant 0 : i32
    return %c0_i32, %c0_i32_0 : i32, i32
  }
  func.func @transform_2(%arg0: i32) -> (i32, i32) {
    %c0_i32 = arith.constant 0 : i32
    %c0_i32_0 = arith.constant 0 : i32
    %c0_i32_1 = arith.constant 0 : i32
    return %c0_i32, %c0_i32_0 : i32, i32
  }
  func.func @transform_3(%arg0: i32) -> (i32, i32) {
    %c0_i32 = arith.constant 0 : i32
    %c0_i32_0 = arith.constant 0 : i32
    %c0_i32_1 = arith.constant 0 : i32
    return %c0_i32, %c0_i32_0 : i32, i32
  }
  func.func @transform_4(%arg0: i32) -> (i32, i32) {
    %c0_i32 = arith.constant 0 : i32
    %c0_i32_0 = arith.constant 0 : i32
    return %arg0, %c0_i32 : i32, i32
  }
}

module attributes {stable_mosaic.version = 11 : i64} {
  func.func @_fused_kernel(%arg0: i32, %arg1: memref<16x128xbf16, #tpu.memory_space<vmem>>, %arg2: memref<128x128xbf16, #tpu.memory_space<vmem>>, %arg3: memref<3x128xf32, #tpu.memory_space<vmem>>, %arg4: memref<128x128xbf16, #tpu.memory_space<vmem>>, %arg5: memref<16x128xf32, #tpu.memory_space<vmem>>) attributes {dimension_semantics = [#tpu.dimension_semantics<parallel>], iteration_bounds = array<i64: 1>, scalar_prefetch = 0 : i64, scratch_operands = 0 : i64, tpu.core_type = #tpu.core_type<tc>, window_params = [{transform_indices = @transform_0, window_bounds = array<i64: 16, 128>}, {pipeline_mode = #tpu.pipeline_mode<synchronous>, transform_indices = @transform_1, window_bounds = array<i64: 128, 128>}, {pipeline_mode = #tpu.pipeline_mode<synchronous>, transform_indices = @transform_2, window_bounds = array<i64: 3, 128>}, {pipeline_mode = #tpu.pipeline_mode<synchronous>, transform_indices = @transform_3, window_bounds = array<i64: 128, 128>}, {transform_indices = @transform_4, window_bounds = array<i64: 16, 128>}]} {
    %c0 = arith.constant 0 : index
    %c0_0 = arith.constant 0 : index
    %0 = vector.load %arg1[%c0, %c0_0] : memref<16x128xbf16, #tpu.memory_space<vmem>>, vector<16x128xbf16>
    %c0_1 = arith.constant 0 : index
    %c0_2 = arith.constant 0 : index
    %1 = vector.load %arg2[%c0_1, %c0_2] : memref<128x128xbf16, #tpu.memory_space<vmem>>, vector<128x128xbf16>
    %cst = arith.constant dense<0.000000e+00> : vector<16x128xf32>
    %2 = tpu.matmul %0, %1, %cst {dimension_numbers = #tpu.dot_dimension_numbers<[1], [0], [0], [1], [0, 0, 1, 1], [], []>} : vector<16x128xbf16>, vector<128x128xbf16>, vector<16x128xf32> -> vector<16x128xf32>
    %c0_3 = arith.constant 0 : index
    %c0_4 = arith.constant 0 : index
    %3 = vector.load %arg3[%c0_3, %c0_4] : memref<3x128xf32, #tpu.memory_space<vmem>>, vector<1x128xf32>
    %4 = vector.broadcast %3 : vector<1x128xf32> to vector<16x128xf32>
    %5 = arith.addf %2, %4 : vector<16x128xf32>
    %cst_5 = arith.constant dense<0.000000e+00> : vector<16xf32>
    %6 = vector.multi_reduction <add>, %5, %cst_5 [1] : vector<16x128xf32> to vector<16xf32>
    %7 = vector.shape_cast %6 : vector<16xf32> to vector<16x1xf32>
    %cst_6 = arith.constant 6.250000e-02 : f32
    %8 = vector.broadcast %cst_6 : f32 to vector<16x1xf32>
    %9 = arith.mulf %7, %8 : vector<16x1xf32>
    %10 = vector.broadcast %9 : vector<16x1xf32> to vector<16x128xf32>
    %11 = arith.subf %5, %10 : vector<16x128xf32>
    %12 = tpu.iota {dimensions = array<i32: 1>} : vector<1x128xi32>
    %c16_i32 = arith.constant 16 : i32
    %13 = vector.broadcast %c16_i32 : i32 to vector<1x128xi32>
    %14 = arith.cmpi slt, %12, %13 : vector<1x128xi32>
    %cst_7 = arith.constant 0.000000e+00 : f32
    %15 = vector.shape_cast %14 : vector<1x128xi1> to vector<1x128xi1>
    %16 = vector.broadcast %15 : vector<1x128xi1> to vector<16x128xi1>
    %17 = vector.broadcast %cst_7 : f32 to vector<16x128xf32>
    %18 = arith.select %16, %11, %17 : vector<16x128xi1>, vector<16x128xf32>
    %19 = arith.mulf %18, %18 : vector<16x128xf32>
    %cst_8 = arith.constant dense<0.000000e+00> : vector<16xf32>
    %20 = vector.multi_reduction <add>, %19, %cst_8 [1] : vector<16x128xf32> to vector<16xf32>
    %21 = vector.shape_cast %20 : vector<16xf32> to vector<16x1xf32>
    %cst_9 = arith.constant 6.250000e-02 : f32
    %22 = vector.broadcast %cst_9 : f32 to vector<16x1xf32>
    %23 = arith.mulf %21, %22 : vector<16x1xf32>
    %cst_10 = arith.constant 9.99999974E-6 : f32
    %24 = vector.broadcast %cst_10 : f32 to vector<16x1xf32>
    %25 = arith.addf %23, %24 : vector<16x1xf32>
    %26 = math.rsqrt %25 : vector<16x1xf32>
    %27 = vector.broadcast %26 : vector<16x1xf32> to vector<16x128xf32>
    %28 = arith.mulf %18, %27 : vector<16x128xf32>
    %c1 = arith.constant 1 : index
    %c0_11 = arith.constant 0 : index
    %29 = vector.load %arg3[%c1, %c0_11] : memref<3x128xf32, #tpu.memory_space<vmem>>, vector<1x128xf32>
    %30 = vector.broadcast %29 : vector<1x128xf32> to vector<16x128xf32>
    %31 = arith.mulf %28, %30 : vector<16x128xf32>
    %c2 = arith.constant 2 : index
    %c0_12 = arith.constant 0 : index
    %32 = vector.load %arg3[%c2, %c0_12] : memref<3x128xf32, #tpu.memory_space<vmem>>, vector<1x128xf32>
    %33 = vector.broadcast %32 : vector<1x128xf32> to vector<16x128xf32>
    %34 = arith.addf %31, %33 : vector<16x128xf32>
    %35 = arith.truncf %34 : vector<16x128xf32> to vector<16x128xbf16>
    %c0_13 = arith.constant 0 : index
    %c0_14 = arith.constant 0 : index
    %36 = vector.load %arg4[%c0_13, %c0_14] : memref<128x128xbf16, #tpu.memory_space<vmem>>, vector<128x128xbf16>
    %cst_15 = arith.constant dense<0.000000e+00> : vector<16x128xf32>
    %37 = tpu.matmul %35, %36, %cst_15 {dimension_numbers = #tpu.dot_dimension_numbers<[1], [0], [0], [1], [0, 0, 1, 1], [], []>} : vector<16x128xbf16>, vector<128x128xbf16>, vector<16x128xf32> -> vector<16x128xf32>
    %c0_16 = arith.constant 0 : index
    %c0_17 = arith.constant 0 : index
    %38 = vector.load %arg5[%c0_16, %c0_17] : memref<16x128xf32, #tpu.memory_space<vmem>>, vector<16x128xf32>
    tpu.vector_store %arg5[%c0_16, %c0_17], %37 {strides = array<i32>} : memref<16x128xf32, #tpu.memory_space<vmem>>, vector<16x128xf32>,
    return
  }
  func.func @transform_0(%arg0: i32) -> (i32, i32) {
    %c0_i32 = arith.constant 0 : i32
    %c0_i32_0 = arith.constant 0 : i32
    return %arg0, %c0_i32 : i32, i32
  }
  func.func @transform_1(%arg0: i32) -> (i32, i32) {
    %c0_i32 = arith.constant 0 : i32
    %c0_i32_0 = arith.constant 0 : i32
    %c0_i32_1 = arith.constant 0 : i32
    return %c0_i32, %c0_i32_0 : i32, i32
  }
  func.func @transform_2(%arg0: i32) -> (i32, i32) {
    %c0_i32 = arith.constant 0 : i32
    %c0_i32_0 = arith.constant 0 : i32
    %c0_i32_1 = arith.constant 0 : i32
    return %c0_i32, %c0_i32_0 : i32, i32
  }
  func.func @transform_3(%arg0: i32) -> (i32, i32) {
    %c0_i32 = arith.constant 0 : i32
    %c0_i32_0 = arith.constant 0 : i32
    %c0_i32_1 = arith.constant 0 : i32
    return %c0_i32, %c0_i32_0 : i32, i32
  }
  func.func @transform_4(%arg0: i32) -> (i32, i32) {
    %c0_i32 = arith.constant 0 : i32
    %c0_i32_0 = arith.constant 0 : i32
    return %arg0, %c0_i32 : i32, i32
  }
}

</mosaic_0001>

<bundles_post_ra>
// kernel: tpu_custom_call.1
= control target key start
LH: loop header
LB: loop body
LE: loop exit
PB: predicated region body
PF: predicated region fallthrough
CT: control target
= control target key end

     0   :  { %9 = vsyncpa [#allocation3], 0  ;;  %s656_s0 = inlined_call_operand.hbm [shape: bf16[16,128], index: 0, kind: input, shape index: {}]   ;;  %s657_s1 = inlined_call_operand.hbm [shape: bf16[128,128], index: 1, kind: input, shape index: {}]   ;;  %s658_s2 = inlined_call_operand.hbm [shape: f32[3,128], index: 2, kind: input, shape index: {}]   ;;  %s659_s3 = inlined_call_operand.hbm [shape: bf16[128,128], index: 3, kind: input, shape index: {}]   ;;  %s660_s4 = inlined_call_operand.hbm [shape: f32[16,128], index: 4, kind: output, shape index: {}]  }
   0x1   :  { %10 = vsyncpa [#allocation6], 0 }
   0x2   :  { %11 = vsyncpa [#allocation9], 0 }
   0x3   :  { %12 = vsyncpa [#allocation4], 0  ;;  %s578_s15 = smov [#allocation5]   ;;  %s579_s17 = smov [#allocation2]  }
   0x4   :  { %s30_s16 = sshll.u32 %s578_s15, 4  ;;  %s18_s18 = sshll.u32 %s579_s17, 4  ;;  %s31_s16 = int_to_ptr.vmem [resolvable:$true] %s30_s16  ;;  %s19_s18 = int_to_ptr.vmem [resolvable:$true] %s18_s18 }
   0x5   :  { %s478_s19 = scalar_lea.vmem %s31_s16, 1024  ;;  %p483_p1 = scmp.lt.s32.totalorder %s31_s16, %s31_s16 }
   0x6   :  { %p479_p0 = scmp.ne.s32.totalorder %s31_s16, %s478_s19  ;;  %p484_p2 = scmp.lt.s32.totalorder %s478_s19, %s478_s19 }
   0x8   :  { %p485_p3 = por %p484_p2, %p483_p1 }
   0xa   :  { %p486_p4 = pnand %p485_p3, %p479_p0 }
   0xc   :  { %489 = shalt.err (!%p486_p4)
}
   0xd   :  { %s580_s20 = smov 64   ;;  %s581_s21 = smov 4  }
   0xe   :  { %36 = dma.hbm_to_vmem [thread:$0]  %s657_s1, 1024, %s31_s16, [#allocation6], %s580_s20, %s580_s20, %s581_s21  }
   0xf   :  { %s498_s24 = scalar_lea.vmem %s19_s18, 128  ;;  %p503_p6 = scmp.lt.s32.totalorder %s19_s18, %s19_s18 }
  0x10   :  { %p499_p5 = scmp.ne.s32.totalorder %s19_s18, %s498_s24  ;;  %p504_p7 = scmp.lt.s32.totalorder %s498_s24, %s498_s24 }
  0x12   :  { %p505_p8 = por %p504_p7, %p503_p6 }
  0x14   :  { %p506_p9 = pnand %p505_p8, %p499_p5 }
  0x16   :  { %509 = shalt.err (!%p506_p9)
}
  0x17   :  { %24 = dma.hbm_to_vmem [thread:$0]  %s656_s0, 128, %s19_s18, [#allocation3], %s580_s20, %s580_s20, %s581_s21  }
  0x18   :  { %s582_s27 = smov [#allocation7]   ;;  %s583_s29 = smov [#allocation8]  }
  0x19   :  { %s43_s28 = sshll.u32 %s582_s27, 4  ;;  %s52_s30 = sshll.u32 %s583_s29, 4  ;;  %s44_s28 = int_to_ptr.vmem [resolvable:$true] %s43_s28  ;;  %s53_s30 = int_to_ptr.vmem [resolvable:$true] %s52_s30 }
  0x1a   :  { %s518_s1 = scalar_lea.vmem %s44_s28, 64  ;;  %p523_p11 = scmp.lt.s32.totalorder %s44_s28, %s44_s28 }
  0x1b   :  { %p519_p10 = scmp.ne.s32.totalorder %s44_s28, %s518_s1  ;;  %p524_p12 = scmp.lt.s32.totalorder %s518_s1, %s518_s1 }
  0x1d   :  { %p525_p13 = por %p524_p12, %p523_p11 }
  0x1f   :  { %p526_p0 = pnand %p525_p13, %p519_p10 }
  0x21   :  { %529 = shalt.err (!%p526_p0)
}
  0x22   :  { %46 = dma.hbm_to_vmem [thread:$0]  %s658_s2, 64, %s44_s28, [#allocation6]  }
  0x23   :  { %s538_s7 = scalar_lea.vmem %s53_s30, 1024  ;;  %p543_p2 = scmp.lt.s32.totalorder %s53_s30, %s53_s30 }
  0x24   :  { %p539_p1 = scmp.ne.s32.totalorder %s53_s30, %s538_s7  ;;  %p544_p3 = scmp.lt.s32.totalorder %s538_s7, %s538_s7 }
  0x26   :  { %p545_p4 = por %p544_p3, %p543_p2 }
  0x28   :  { %p546_p5 = pnand %p545_p4, %p539_p1 }
  0x2a   :  { %549 = shalt.err (!%p546_p5)
}
  0x2b   :  { %58 = dma.hbm_to_vmem [thread:$0]  %s659_s3, 1024, %s53_s30, [#allocation9], %s580_s20, %s580_s20, %s581_s21  }
  0x2c   :  { %570 = dma.done.wait [#allocation3], 128  }
  0x2d   :  { %571 = vsyncadd [#allocation3], 4294967168 }
  0x2e   :  { %572 = dma.done.wait [#allocation6], 1088  }
  0x2f   :  { %573 = vsyncadd [#allocation6], 4294966208 }
  0x30   :  { %574 = dma.done.wait [#allocation9], 1024  }
  0x31   :  { %575 = vsyncadd [#allocation9], 4294966272  ;;  %v584_v0 = vmov 0.0   ;;  %vm585_vm0 = vmmov 0   ;;  %v449_v1 = vld [vmem:[#allocation5 + $0x38] sm:$0xff]   ;;  %v450_v2 = vld [vmem:[#allocation5 + $0x30] sm:$0xff]   ;;  %v198_v18 = vlaneseq }
  0x32   :  { %398 = vmatprep.subr.bf16.mxu0 %v584_v0  ;;  %414 = vmatprep.mubr.msk.bf16.mxu0 %vm585_vm0, %v584_v0  ;;  %v451_v3 = vld [vmem:[#allocation5 + $0x28] sm:$0xff]   ;;  %v452_v4 = vld [vmem:[#allocation5 + $0x20] sm:$0xff]   ;;  %v453_v5 = vld [vmem:[#allocation5 + $0x18] sm:$0xff]   ;;  %s586_s2 = smov [#allocation10]  }
  0x33   :  { %418 = vmatprep.subr.bf16.mxu1 %v584_v0  ;;  %434 = vmatprep.mubr.msk.bf16.mxu1 %vm585_vm0, %v584_v0  ;;  %v454_v6 = vld [vmem:[#allocation5 + $0x10] sm:$0xff]   ;;  %v455_v7 = vld [vmem:[#allocation5 + $0x8] sm:$0xff]   ;;  %v456_v8 = vld [vmem:[#allocation5] sm:$0xff]   ;;  %v199_v19 = vand.u32 127, %v198_v18  ;;  %s346_s3 = sshll.u32 %s586_s2, 4  ;;  %s347_s3 = int_to_ptr.vmem [resolvable:$true] %s346_s3 }
  0x34   :  { %399 = vmatpush3.bf16.msra.mxu0 %v449_v1  ;;  %v457_v9 = vld [vmem:[#allocation2] sm:$0xff]   ;;  %v360_v10 = vld [vmem:[#allocation7] ss:$0 sm:$0xff]  ;;  %v460_v31 = vld [vmem:[#allocation8 + $0x28] sm:$0xff]   ;;  %s550_s9 = scalar_lea.vmem %s347_s3, 256  ;;  %p555_p7 = scmp.lt.s32.totalorder %s347_s3, %s347_s3 }
  0x35   :  { %400 = vmatprep.subr.bf16.mxu0 %v584_v0  ;;  %v458_v17 = vld [vmem:[#allocation8 + $0x38] sm:$0xff]   ;;  %vm200_vm1 = vcmp.lt.s32.totalorder %v199_v19, 16  ;;  %v459_v30 = vld [vmem:[#allocation8 + $0x30] sm:$0xff]   ;;  %v461_v32 = vld [vmem:[#allocation8 + $0x20] sm:$0xff]   ;;  %p551_p6 = scmp.ne.s32.totalorder %s347_s3, %s550_s9  ;;  %p556_p8 = scmp.lt.s32.totalorder %s550_s9, %s550_s9 }
  0x36   :  { %419 = vmatpush3.bf16.msra.mxu1 %v458_v17  ;;  %v462_v33 = vld [vmem:[#allocation8 + $0x18] sm:$0xff]   ;;  %v463_v34 = vld [vmem:[#allocation8 + $0x10] sm:$0xff]   ;;  %v464_v35 = vld [vmem:[#allocation8 + $0x8] sm:$0xff]  }
  0x37   :  { %420 = vmatprep.subr.bf16.mxu1 %v584_v0  ;;  %v465_v36 = vld [vmem:[#allocation8] sm:$0xff]   ;;  %v370_v45 = vld [vmem:[#allocation7 + $0x1] ss:$0 sm:$0xff]  ;;  %v371_v49 = vld [vmem:[#allocation7 + $0x2] ss:$0 sm:$0xff]  ;;  %p557_p9 = por %p556_p8, %p555_p7 }
  0x38   :  { %401 = vmatpush3.bf16.msra.mxu0 %v450_v2 }
  0x39   :  { %402 = vmatprep.subr.bf16.mxu0 %v584_v0  ;;  %p558_p10 = pnand %p557_p9, %p551_p6 }
  0x3a   :  { %421 = vmatpush3.bf16.msra.mxu1 %v459_v30 }
  0x3b   :  { %422 = vmatprep.subr.bf16.mxu1 %v584_v0 }
  0x3c   :  { %403 = vmatpush3.bf16.msra.mxu0 %v451_v3 }
  0x3d   :  { %404 = vmatprep.subr.bf16.mxu0 %v584_v0 }
  0x3e   :  { %423 = vmatpush3.bf16.msra.mxu1 %v460_v31 }
  0x3f   :  { %424 = vmatprep.subr.bf16.mxu1 %v584_v0 }
  0x40   :  { %405 = vmatpush3.bf16.msra.mxu0 %v452_v4 }
  0x41   :  { %406 = vmatprep.subr.bf16.mxu0 %v584_v0 }
  0x42   :  { %425 = vmatpush3.bf16.msra.mxu1 %v461_v32 }
  0x43   :  { %426 = vmatprep.subr.bf16.mxu1 %v584_v0 }
  0x44   :  { %407 = vmatpush3.bf16.msra.mxu0 %v453_v5 }
  0x45   :  { %408 = vmatprep.subr.bf16.mxu0 %v584_v0 }
  0x46   :  { %427 = vmatpush3.bf16.msra.mxu1 %v462_v33 }
  0x47   :  { %428 = vmatprep.subr.bf16.mxu1 %v584_v0 }
  0x48   :  { %409 = vmatpush3.bf16.msra.mxu0 %v454_v6 }
  0x49   :  { %410 = vmatprep.subr.bf16.mxu0 %v584_v0 }
  0x4a   :  { %429 = vmatpush3.bf16.msra.mxu1 %v463_v34 }
  0x4b   :  { %430 = vmatprep.subr.bf16.mxu1 %v584_v0 }
  0x4c   :  { %411 = vmatpush3.bf16.msra.mxu0 %v455_v7 }
  0x4d   :  { %412 = vmatprep.subr.bf16.mxu0 %v584_v0 }
  0x4e   :  { %431 = vmatpush3.bf16.msra.mxu1 %v464_v35 }
  0x4f   :  { %432 = vmatprep.subr.bf16.mxu1 %v584_v0 }
  0x50   :  { %413 = vmatpush3.bf16.msra.mxu0 %v456_v8 }
  0x52   :  { %433 = vmatpush3.bf16.msra.mxu1 %v465_v36 }
  0x53   :  { %415 = vmatmul.mubr.bf16.vlgmr.msra.gmra.mxu0 %v457_v9 }
 0x113   :  { %v183_v11 = vpop.f32.mrf.mxu0 }
 0x114   :  { %v184_v12 = vadd.f32 %v360_v10, %v183_v11 }
 0x115   :  { %v416_v13 = vpop.f32.mrf.mxu0 }
 0x116   :  { %190 = vadd.xlane.f32.xlu0 %v184_v12 }
 0x117   :  { %v186_v14 = vpop.f32.mrf.mxu0 }
 0x118   :  { %v187_v15 = vadd.f32 %v360_v10, %v186_v14 }
 0x119   :  { %v417_v16 = vpop.f32.mrf.mxu0 }
 0x11a   :  { %192 = vadd.xlane.f32.xlu0 %v187_v15 }
 0x19f   :  { %v191_v20 = vpop.xlane.xlu0 %190 }
 0x1a0   :  { %v194_v21 = vmul.f32 0.0625, %v191_v20 }
 0x1a2   :  { %v196_v22 = vsub.f32 %v184_v12, %v194_v21 }
 0x1a3   :  { %v193_v23 = vpop.xlane.xlu0 %192 }
 0x1a4   :  { %v195_v24 = vmul.f32 0.0625, %v193_v23  ;;  %v203_v25 = vsel %vm200_vm1, %v196_v22, 0.0 }
 0x1a5   :  { %v205_v26 = vmul.f32 %v203_v25, %v203_v25 }
 0x1a6   :  { %v197_v27 = vsub.f32 %v187_v15, %v195_v24 }
 0x1a7   :  { %207 = vadd.xlane.f32.xlu1 %v205_v26 }
 0x1a8   :  { %v204_v28 = vsel %vm200_vm1, %v197_v27, 0.0 }
 0x1a9   :  { %v206_v29 = vmul.f32 %v204_v28, %v204_v28 }
 0x1ab   :  { %209 = vadd.xlane.f32.xlu1 %v206_v29 }
 0x230   :  { %v208_v37 = vpop.xlane.xlu1 %207 }
 0x231   :  { %v211_v38 = vmul.f32 0.0625, %v208_v37 }
 0x233   :  { %v213_v39 = vadd.f32 1e-05, %v211_v38 }
 0x234   :  { %v210_v40 = vpop.xlane.xlu1 %209 }
 0x235   :  { %466 = vrsqrt.f32 %v213_v39  ;;  %v212_v41 = vmul.f32 0.0625, %v210_v40 }
 0x237   :  { %v214_v42 = vadd.f32 1e-05, %v212_v41 }
 0x239   :  { %468 = vrsqrt.f32 %v214_v42 }
 0x242   :  { %v467_v43 = vpop.eup %466 }
 0x243   :  { %v217_v44 = vmul.f32 %v467_v43, %v203_v25 }
 0x245   :  { %v224_v48 = vmul.f32 %v370_v45, %v217_v44 }
 0x246   :  { %v469_v46 = vpop.eup %468 }
 0x247   :  { %v218_v47 = vmul.f32 %v469_v46, %v204_v28  ;;  %v231_v51 = vadd.f32 %v371_v49, %v224_v48 }
 0x249   :  { %v225_v50 = vmul.f32 %v370_v45, %v218_v47 }
 0x24b   :  { %v232_v52 = vadd.f32 %v371_v49, %v225_v50 }
 0x24d   :  { %v233_v53 = vpack.c.bf16 %v232_v52, %v231_v51 }
 0x24f   :  { %435 = vmatmul.mubr.bf16.vlgmr.msra.gmra.mxu1 %v233_v53 }
 0x30f   :  { %v332_v54 = vpop.f32.mrf.mxu1 }
 0x310   :  { %339 = vst [vmem:[#allocation10] sm:$0xff] %v332_v54 }
 0x311   :  { %v436_v55 = vpop.f32.mrf.mxu1 }
 0x313   :  { %v335_v56 = vpop.f32.mrf.mxu1 }
 0x314   :  { %340 = vst [vmem:[#allocation10 + $0x8] sm:$0xff] %v335_v56 }
 0x315   :  { %v437_v57 = vpop.f32.mrf.mxu1 }
 0x316   :  { %561 = shalt.err (!%p558_p10)
}
 0x317   :  { %s587_s10 = smov 128   ;;  %s588_s11 = smov 8  }
 0x318   :  { %352 = dma.vmem_to_hbm [thread:$0]  %s347_s3, 256, %s660_s4, [#allocation4], %s587_s10, %s587_s10, %s588_s11  }
 0x319   :  { %576 = dma.done.wait [#allocation4], 256  }
 0x31a   :  { %577 = vsyncadd [#allocation4], 4294967040 }
 0x31b   :  { %356 = vsyncpa [#allocation3], 1 }
 0x31c   :  { %357 = vsyncpa [#allocation6], 1 }
 0x31d   :  { %358 = vsyncpa [#allocation9], 1 }
 0x31e   :  { %359 = vsyncpa [#allocation4], 1 }

// kernel: tpu_custom_call.1
= control target key start
LH: loop header
LB: loop body
LE: loop exit
PB: predicated region body
PF: predicated region fallthrough
CT: control target
= control target key end

     0   :  { %9 = vsyncpa [#allocation3], 0  ;;  %s656_s0 = inlined_call_operand.hbm [shape: bf16[16,128], index: 0, kind: input, shape index: {}]   ;;  %s657_s1 = inlined_call_operand.hbm [shape: bf16[128,128], index: 1, kind: input, shape index: {}]   ;;  %s658_s2 = inlined_call_operand.hbm [shape: f32[3,128], index: 2, kind: input, shape index: {}]   ;;  %s659_s3 = inlined_call_operand.hbm [shape: bf16[128,128], index: 3, kind: input, shape index: {}]   ;;  %s660_s4 = inlined_call_operand.hbm [shape: f32[16,128], index: 4, kind: output, shape index: {}]  }
   0x1   :  { %10 = vsyncpa [#allocation6], 0 }
   0x2   :  { %11 = vsyncpa [#allocation9], 0 }
   0x3   :  { %12 = vsyncpa [#allocation4], 0  ;;  %s578_s15 = smov [#allocation5]   ;;  %s579_s17 = smov [#allocation2]  }
   0x4   :  { %s30_s16 = sshll.u32 %s578_s15, 4  ;;  %s18_s18 = sshll.u32 %s579_s17, 4  ;;  %s31_s16 = int_to_ptr.vmem [resolvable:$true] %s30_s16  ;;  %s19_s18 = int_to_ptr.vmem [resolvable:$true] %s18_s18 }
   0x5   :  { %s478_s19 = scalar_lea.vmem %s31_s16, 1024  ;;  %p483_p1 = scmp.lt.s32.totalorder %s31_s16, %s31_s16 }
   0x6   :  { %p479_p0 = scmp.ne.s32.totalorder %s31_s16, %s478_s19  ;;  %p484_p2 = scmp.lt.s32.totalorder %s478_s19, %s478_s19 }
   0x8   :  { %p485_p3 = por %p484_p2, %p483_p1 }
   0xa   :  { %p486_p4 = pnand %p485_p3, %p479_p0 }
   0xc   :  { %489 = shalt.err (!%p486_p4)
}
   0xd   :  { %s580_s20 = smov 64   ;;  %s581_s21 = smov 4  }
   0xe   :  { %36 = dma.hbm_to_vmem [thread:$0]  %s657_s1, 1024, %s31_s16, [#allocation6], %s580_s20, %s580_s20, %s581_s21  }
   0xf   :  { %s498_s24 = scalar_lea.vmem %s19_s18, 128  ;;  %p503_p6 = scmp.lt.s32.totalorder %s19_s18, %s19_s18 }
  0x10   :  { %p499_p5 = scmp.ne.s32.totalorder %s19_s18, %s498_s24  ;;  %p504_p7 = scmp.lt.s32.totalorder %s498_s24, %s498_s24 }
  0x12   :  { %p505_p8 = por %p504_p7, %p503_p6 }
  0x14   :  { %p506_p9 = pnand %p505_p8, %p499_p5 }
  0x16   :  { %509 = shalt.err (!%p506_p9)
}
  0x17   :  { %24 = dma.hbm_to_vmem [thread:$0]  %s656_s0, 128, %s19_s18, [#allocation3], %s580_s20, %s580_s20, %s581_s21  }
  0x18   :  { %s582_s27 = smov [#allocation7]   ;;  %s583_s29 = smov [#allocation8]  }
  0x19   :  { %s43_s28 = sshll.u32 %s582_s27, 4  ;;  %s52_s30 = sshll.u32 %s583_s29, 4  ;;  %s44_s28 = int_to_ptr.vmem [resolvable:$true] %s43_s28  ;;  %s53_s30 = int_to_ptr.vmem [resolvable:$true] %s52_s30 }
  0x1a   :  { %s518_s1 = scalar_lea.vmem %s44_s28, 64  ;;  %p523_p11 = scmp.lt.s32.totalorder %s44_s28, %s44_s28 }
  0x1b   :  { %p519_p10 = scmp.ne.s32.totalorder %s44_s28, %s518_s1  ;;  %p524_p12 = scmp.lt.s32.totalorder %s518_s1, %s518_s1 }
  0x1d   :  { %p525_p13 = por %p524_p12, %p523_p11 }
  0x1f   :  { %p526_p0 = pnand %p525_p13, %p519_p10 }
  0x21   :  { %529 = shalt.err (!%p526_p0)
}
  0x22   :  { %46 = dma.hbm_to_vmem [thread:$0]  %s658_s2, 64, %s44_s28, [#allocation6]  }
  0x23   :  { %s538_s7 = scalar_lea.vmem %s53_s30, 1024  ;;  %p543_p2 = scmp.lt.s32.totalorder %s53_s30, %s53_s30 }
  0x24   :  { %p539_p1 = scmp.ne.s32.totalorder %s53_s30, %s538_s7  ;;  %p544_p3 = scmp.lt.s32.totalorder %s538_s7, %s538_s7 }
  0x26   :  { %p545_p4 = por %p544_p3, %p543_p2 }
  0x28   :  { %p546_p5 = pnand %p545_p4, %p539_p1 }
  0x2a   :  { %549 = shalt.err (!%p546_p5)
}
  0x2b   :  { %58 = dma.hbm_to_vmem [thread:$0]  %s659_s3, 1024, %s53_s30, [#allocation9], %s580_s20, %s580_s20, %s581_s21  }
  0x2c   :  { %570 = dma.done.wait [#allocation3], 128  }
  0x2d   :  { %571 = vsyncadd [#allocation3], 4294967168 }
  0x2e   :  { %572 = dma.done.wait [#allocation6], 1088  }
  0x2f   :  { %573 = vsyncadd [#allocation6], 4294966208 }
  0x30   :  { %574 = dma.done.wait [#allocation9], 1024  }
  0x31   :  { %575 = vsyncadd [#allocation9], 4294966272  ;;  %v584_v0 = vmov 0.0   ;;  %vm585_vm0 = vmmov 0   ;;  %v449_v1 = vld [vmem:[#allocation5 + $0x38] sm:$0xff]   ;;  %v450_v2 = vld [vmem:[#allocation5 + $0x30] sm:$0xff]   ;;  %v198_v18 = vlaneseq }
  0x32   :  { %398 = vmatprep.subr.bf16.mxu0 %v584_v0  ;;  %414 = vmatprep.mubr.msk.bf16.mxu0 %vm585_vm0, %v584_v0  ;;  %v451_v3 = vld [vmem:[#allocation5 + $0x28] sm:$0xff]   ;;  %v452_v4 = vld [vmem:[#allocation5 + $0x20] sm:$0xff]   ;;  %v453_v5 = vld [vmem:[#allocation5 + $0x18] sm:$0xff]   ;;  %s586_s2 = smov [#allocation10]  }
  0x33   :  { %418 = vmatprep.subr.bf16.mxu1 %v584_v0  ;;  %434 = vmatprep.mubr.msk.bf16.mxu1 %vm585_vm0, %v584_v0  ;;  %v454_v6 = vld [vmem:[#allocation5 + $0x10] sm:$0xff]   ;;  %v455_v7 = vld [vmem:[#allocation5 + $0x8] sm:$0xff]   ;;  %v456_v8 = vld [vmem:[#allocation5] sm:$0xff]   ;;  %v199_v19 = vand.u32 127, %v198_v18  ;;  %s346_s3 = sshll.u32 %s586_s2, 4  ;;  %s347_s3 = int_to_ptr.vmem [resolvable:$true] %s346_s3 }
  0x34   :  { %399 = vmatpush3.bf16.msra.mxu0 %v449_v1  ;;  %v457_v9 = vld [vmem:[#allocation2] sm:$0xff]   ;;  %v360_v10 = vld [vmem:[#allocation7] ss:$0 sm:$0xff]  ;;  %v460_v31 = vld [vmem:[#allocation8 + $0x28] sm:$0xff]   ;;  %s550_s9 = scalar_lea.vmem %s347_s3, 256  ;;  %p555_p7 = scmp.lt.s32.totalorder %s347_s3, %s347_s3 }
  0x35   :  { %400 = vmatprep.subr.bf16.mxu0 %v584_v0  ;;  %v458_v17 = vld [vmem:[#allocation8 + $0x38] sm:$0xff]   ;;  %vm200_vm1 = vcmp.lt.s32.totalorder %v199_v19, 16  ;;  %v459_v30 = vld [vmem:[#allocation8 + $0x30] sm:$0xff]   ;;  %v461_v32 = vld [vmem:[#allocation8 + $0x20] sm:$0xff]   ;;  %p551_p6 = scmp.ne.s32.totalorder %s347_s3, %s550_s9  ;;  %p556_p8 = scmp.lt.s32.totalorder %s550_s9, %s550_s9 }
  0x36   :  { %419 = vmatpush3.bf16.msra.mxu1 %v458_v17  ;;  %v462_v33 = vld [vmem:[#allocation8 + $0x18] sm:$0xff]   ;;  %v463_v34 = vld [vmem:[#allocation8 + $0x10] sm:$0xff]   ;;  %v464_v35 = vld [vmem:[#allocation8 + $0x8] sm:$0xff]  }
  0x37   :  { %420 = vmatprep.subr.bf16.mxu1 %v584_v0  ;;  %v465_v36 = vld [vmem:[#allocation8] sm:$0xff]   ;;  %v370_v45 = vld [vmem:[#allocation7 + $0x1] ss:$0 sm:$0xff]  ;;  %v371_v49 = vld [vmem:[#allocation7 + $0x2] ss:$0 sm:$0xff]  ;;  %p557_p9 = por %p556_p8, %p555_p7 }
  0x38   :  { %401 = vmatpush3.bf16.msra.mxu0 %v450_v2 }
  0x39   :  { %402 = vmatprep.subr.bf16.mxu0 %v584_v0  ;;  %p558_p10 = pnand %p557_p9, %p551_p6 }
  0x3a   :  { %421 = vmatpush3.bf16.msra.mxu1 %v459_v30 }
  0x3b   :  { %422 = vmatprep.subr.bf16.mxu1 %v584_v0 }
  0x3c   :  { %403 = vmatpush3.bf16.msra.mxu0 %v451_v3 }
  0x3d   :  { %404 = vmatprep.subr.bf16.mxu0 %v584_v0 }
  0x3e   :  { %423 = vmatpush3.bf16.msra.mxu1 %v460_v31 }
  0x3f   :  { %424 = vmatprep.subr.bf16.mxu1 %v584_v0 }
  0x40   :  { %405 = vmatpush3.bf16.msra.mxu0 %v452_v4 }
  0x41   :  { %406 = vmatprep.subr.bf16.mxu0 %v584_v0 }
  0x42   :  { %425 = vmatpush3.bf16.msra.mxu1 %v461_v32 }
  0x43   :  { %426 = vmatprep.subr.bf16.mxu1 %v584_v0 }
  0x44   :  { %407 = vmatpush3.bf16.msra.mxu0 %v453_v5 }
  0x45   :  { %408 = vmatprep.subr.bf16.mxu0 %v584_v0 }
  0x46   :  { %427 = vmatpush3.bf16.msra.mxu1 %v462_v33 }
  0x47   :  { %428 = vmatprep.subr.bf16.mxu1 %v584_v0 }
  0x48   :  { %409 = vmatpush3.bf16.msra.mxu0 %v454_v6 }
  0x49   :  { %410 = vmatprep.subr.bf16.mxu0 %v584_v0 }
  0x4a   :  { %429 = vmatpush3.bf16.msra.mxu1 %v463_v34 }
  0x4b   :  { %430 = vmatprep.subr.bf16.mxu1 %v584_v0 }
  0x4c   :  { %411 = vmatpush3.bf16.msra.mxu0 %v455_v7 }
  0x4d   :  { %412 = vmatprep.subr.bf16.mxu0 %v584_v0 }
  0x4e   :  { %431 = vmatpush3.bf16.msra.mxu1 %v464_v35 }
  0x4f   :  { %432 = vmatprep.subr.bf16.mxu1 %v584_v0 }
  0x50   :  { %413 = vmatpush3.bf16.msra.mxu0 %v456_v8 }
  0x52   :  { %433 = vmatpush3.bf16.msra.mxu1 %v465_v36 }
  0x53   :  { %415 = vmatmul.mubr.bf16.vlgmr.msra.gmra.mxu0 %v457_v9 }
 0x113   :  { %v183_v11 = vpop.f32.mrf.mxu0 }
 0x114   :  { %v184_v12 = vadd.f32 %v360_v10, %v183_v11 }
 0x115   :  { %v416_v13 = vpop.f32.mrf.mxu0 }
 0x116   :  { %190 = vadd.xlane.f32.xlu0 %v184_v12 }
 0x117   :  { %v186_v14 = vpop.f32.mrf.mxu0 }
 0x118   :  { %v187_v15 = vadd.f32 %v360_v10, %v186_v14 }
 0x119   :  { %v417_v16 = vpop.f32.mrf.mxu0 }
 0x11a   :  { %192 = vadd.xlane.f32.xlu0 %v187_v15 }
 0x19f   :  { %v191_v20 = vpop.xlane.xlu0 %190 }
 0x1a0   :  { %v194_v21 = vmul.f32 0.0625, %v191_v20 }
 0x1a2   :  { %v196_v22 = vsub.f32 %v184_v12, %v194_v21 }
 0x1a3   :  { %v193_v23 = vpop.xlane.xlu0 %192 }
 0x1a4   :  { %v195_v24 = vmul.f32 0.0625, %v193_v23  ;;  %v203_v25 = vsel %vm200_vm1, %v196_v22, 0.0 }
 0x1a5   :  { %v205_v26 = vmul.f32 %v203_v25, %v203_v25 }
 0x1a6   :  { %v197_v27 = vsub.f32 %v187_v15, %v195_v24 }
 0x1a7   :  { %207 = vadd.xlane.f32.xlu1 %v205_v26 }
 0x1a8   :  { %v204_v28 = vsel %vm200_vm1, %v197_v27, 0.0 }
 0x1a9   :  { %v206_v29 = vmul.f32 %v204_v28, %v204_v28 }
 0x1ab   :  { %209 = vadd.xlane.f32.xlu1 %v206_v29 }
 0x230   :  { %v208_v37 = vpop.xlane.xlu1 %207 }
 0x231   :  { %v211_v38 = vmul.f32 0.0625, %v208_v37 }
 0x233   :  { %v213_v39 = vadd.f32 1e-05, %v211_v38 }
 0x234   :  { %v210_v40 = vpop.xlane.xlu1 %209 }
 0x235   :  { %466 = vrsqrt.f32 %v213_v39  ;;  %v212_v41 = vmul.f32 0.0625, %v210_v40 }
 0x237   :  { %v214_v42 = vadd.f32 1e-05, %v212_v41 }
 0x239   :  { %468 = vrsqrt.f32 %v214_v42 }
 0x242   :  { %v467_v43 = vpop.eup %466 }
 0x243   :  { %v217_v44 = vmul.f32 %v467_v43, %v203_v25 }
 0x245   :  { %v224_v48 = vmul.f32 %v370_v45, %v217_v44 }
 0x246   :  { %v469_v46 = vpop.eup %468 }
 0x247   :  { %v218_v47 = vmul.f32 %v469_v46, %v204_v28  ;;  %v231_v51 = vadd.f32 %v371_v49, %v224_v48 }
 0x249   :  { %v225_v50 = vmul.f32 %v370_v45, %v218_v47 }
 0x24b   :  { %v232_v52 = vadd.f32 %v371_v49, %v225_v50 }
 0x24d   :  { %v233_v53 = vpack.c.bf16 %v232_v52, %v231_v51 }
 0x24f   :  { %435 = vmatmul.mubr.bf16.vlgmr.msra.gmra.mxu1 %v233_v53 }
 0x30f   :  { %v332_v54 = vpop.f32.mrf.mxu1 }
 0x310   :  { %339 = vst [vmem:[#allocation10] sm:$0xff] %v332_v54 }
 0x311   :  { %v436_v55 = vpop.f32.mrf.mxu1 }
 0x313   :  { %v335_v56 = vpop.f32.mrf.mxu1 }
 0x314   :  { %340 = vst [vmem:[#allocation10 + $0x8] sm:$0xff] %v335_v56 }
 0x315   :  { %v437_v57 = vpop.f32.mrf.mxu1 }
 0x316   :  { %561 = shalt.err (!%p558_p10)
}
 0x317   :  { %s587_s10 = smov 128   ;;  %s588_s11 = smov 8  }
 0x318   :  { %352 = dma.vmem_to_hbm [thread:$0]  %s347_s3, 256, %s660_s4, [#allocation4], %s587_s10, %s587_s10, %s588_s11  }
 0x319   :  { %576 = dma.done.wait [#allocation4], 256  }
 0x31a   :  { %577 = vsyncadd [#allocation4], 4294967040 }
 0x31b   :  { %356 = vsyncpa [#allocation3], 1 }
 0x31c   :  { %357 = vsyncpa [#allocation6], 1 }
 0x31d   :  { %358 = vsyncpa [#allocation9], 1 }
 0x31e   :  { %359 = vsyncpa [#allocation4], 1 }

</bundles_post_ra>
